<compile_context>
chip_gen: v6e
topology: v6e:2x2x1
jax: 0.10.0
libtpu: 0.0.40
codegen_flags: <defaults>
</compile_context>

<pallas_src>
import functools

import numpy as np
import jax
import jax.numpy as jnp
from jax.experimental import pallas as pl
from jax.experimental.pallas import tpu as pltpu


# ------------------------------ Pallas kernel --------------------------------

def _fused_upsampling_kernel(xup_ref, x_ref, w1_ref, wde_ref, w3_ref, bias_ref,
                             mask_ref, o_ref, *, hid, hid_p, W):
    """UpsamplingBlock forward for one lane chunk (whole images), phase-stacked.

    Layout: activations are (C, L) with flattened (batch, spatial) on lanes
    (lane = n*H*W + m*W + w).  Output row (ph*Cout + c), ph = 2*dh + dw, holds
    the final value at spatial position (2*m + dh, 2*w + dw) of image n.
    """
    f32, bf16 = jnp.float32, jnp.bfloat16
    L = x_ref.shape[-1]

    # deconv[0]: 1x1 conv (BN scale folded into w1) + bias + ReLU -> (hid_p, L).
    h1 = jnp.dot(w1_ref[...], x_ref[...], preferred_element_type=f32)
    h1 = jnp.maximum(h1 + bias_ref[0:hid_p, :], 0.0)

    # Polyphase ConvTranspose2d(3, s=2, p=1, op=1): output phase (dh, dw) only
    # needs taps in[m, n], in[m, n+1], in[m+1, n], in[m+1, n+1].  Shifted taps
    # via XLU lane rolls (shift-left-by-k == roll by L-k); masks zero the
    # row/column wrap-around (also covers image boundaries in the lane axis).
    mcol = mask_ref[0:1, :]                            # 0 where n == W-1
    mrow = mask_ref[1:2, :]                            # 0 where m == H-1
    mcr = mask_ref[2:3, :]                             # mcol * mrow
    t_a = h1                                           # in[m,   n  ]
    t_b = pltpu.roll(h1, L - 1, axis=1) * mcol         # in[m,   n+1]
    t_c = pltpu.roll(h1, L - W, axis=1) * mrow         # in[m+1, n  ]
    t_d = pltpu.roll(h1, L - W - 1, axis=1) * mcr      # in[m+1, n+1]
    taps = jnp.concatenate([t_a, t_b, t_c, t_d], axis=0).astype(bf16)  # (4*hid_p, L)

    # deconv[1]: all 4 output phases in ONE MXU dot (BN scale folded into rows),
    # then bias + ReLU.
    h2 = jnp.dot(wde_ref[...], taps, preferred_element_type=f32)        # (4*hid, L)
    h2 = jnp.maximum(h2 + bias_ref[hid_p:hid_p + 4 * hid, :], 0.0)

    # deconv[2]: per-phase 1x1 conv (block-diagonal, BN scale folded); its bias
    # was folded into the main-branch input in the wrapper.
    xd = jnp.dot(w3_ref[...], h2.astype(bf16), preferred_element_type=f32)  # (4*cout, L)

    # Main branch (1x1 conv + BN + bilinear x2 already applied in the wrapper —
    # they commute with each other): residual add + ReLU, lane-dense store.
    o_ref[...] = jnp.maximum(xup_ref[...].astype(f32) + xd, 0.0).astype(o_ref.dtype)


# ------------------------------- glue / setup --------------------------------

def interp_matrix_np(in_size, out_size):
    """1-D bilinear interpolation matrix (align_corners=True), numpy/trace-time."""
    A = np.zeros((out_size, in_size), np.float32)
    if out_size == 1:
        A[0, 0] = 1.0
        return A
    src = np.arange(out_size, dtype=np.float64) * (in_size - 1) / (out_size - 1)
    lo = np.minimum(np.floor(src).astype(np.int64), in_size - 1)
    hi = np.minimum(lo + 1, in_size - 1)
    frac = (src - lo).astype(np.float32)
    A[np.arange(out_size), lo] += 1.0 - frac
    A[np.arange(out_size), hi] += frac
    return A


def _num_lane_chunks(batch, hw):
    """Grid size: 1 on single-TC chips (v5e/v6e); 2 on v7x (two TensorCores),
    provided the lane axis splits into image-aligned, 128-multiple chunks."""
    try:
        kind = jax.devices()[0].device_kind.lower()
    except Exception:
        kind = ""
    g = 2 if ("v7" in kind or "tpu7" in kind) else 1
    if batch % g != 0 or ((batch // g) * hw) % 128 != 0:
        g = 1
    return g


@jax.jit
def upsampling_block_forward(x_nchw, pool_nchw, params):
    f32, bf16 = jnp.float32, jnp.bfloat16
    x = x_nchw.astype(f32)
    pool = pool_nchw.astype(f32)
    N, Cin, H, W = x.shape
    HW = H * W
    L = N * HW
    hid = params['w1'].shape[0]
    hid_p = ((hid + 7) // 8) * 8          # pad hidden channels to a sublane tile
    cout = params['w3'].shape[0]

    # Lane-dense layout assumption (unmasked vst, aligned lane chunks).
    assert HW % 128 == 0, "H*W must be a multiple of 128 for the lane-dense layout"

    # ---- main branch in the wrapper (commutes with the bilinear upsample) ----
    # y = BN(conv1x1(x + pool)); bilinear x2 (align_corners) preserves a
    # per-channel constant, so b4 (and the deconv-output bias b3) are added here
    # and the kernel main branch becomes a pure add + ReLU.
    w4s = params['w4'] * params['s4'][:, None]
    bmain = (params['b4'] + params['b3'])[None, :, None, None]
    y = jnp.einsum('oi,nihw->nohw', w4s, x + pool) + bmain            # (N,cout,H,W)
    a_h = jnp.asarray(interp_matrix_np(H, 2 * H))                     # (2H, H)
    a_w = jnp.asarray(interp_matrix_np(W, 2 * W))                     # (2W, W)
    up = jnp.einsum('ph,nchw->ncpw', a_h, y)
    up = jnp.einsum('qw,ncpw->ncpq', a_w, up)                         # (N,cout,2H,2W)
    # Phase split + fold batch into lanes -> (4*cout, N*H*W), bf16.
    up = up.reshape(N, cout, H, 2, W, 2)
    up = jnp.transpose(up, (3, 5, 1, 0, 2, 4)).reshape(4 * cout, L).astype(bf16)
    x_flat = jnp.transpose(x, (1, 0, 2, 3)).reshape(Cin, L).astype(bf16)

    # ---- fold BN scales into bf16 weights ------------------------------------
    w1s = params['w1'] * params['s1'][:, None]                        # (hid, Cin)
    if hid_p != hid:
        w1s = jnp.pad(w1s, ((0, hid_p - hid), (0, 0)))
    w1s = w1s.astype(bf16)

    # Polyphase ConvTranspose weight (PyTorch layout Wt[ci, co, kh, kw]): row
    # block ph = 2*dh + dw, column blocks act on taps [A | B | C | D].
    wt2 = params['wt2']
    zb = jnp.zeros((hid, hid), f32)
    t = lambda kh, kw: wt2[:, :, kh, kw].T                            # (co, ci)
    wde = jnp.concatenate([
        jnp.concatenate([t(1, 1), zb,      zb,      zb     ], axis=1),
        jnp.concatenate([t(1, 2), t(1, 0), zb,      zb     ], axis=1),
        jnp.concatenate([t(2, 1), zb,      t(0, 1), zb     ], axis=1),
        jnp.concatenate([t(2, 2), t(2, 0), t(0, 2), t(0, 0)], axis=1),
    ], axis=0)                                                        # (4*hid, 4*hid)
    wde = wde * jnp.tile(params['s2'], 4)[:, None]
    if hid_p != hid:                                                  # zero cols for pad channels
        wde = jnp.pad(wde.reshape(4 * hid, 4, hid),
                      ((0, 0), (0, 0), (0, hid_p - hid))).reshape(4 * hid, 4 * hid_p)
    wde = wde.astype(bf16)

    w3bd = (jnp.kron(jnp.eye(4, dtype=f32), params['w3'])
            * jnp.tile(params['s3'], 4)[:, None]).astype(bf16)        # (4*cout, 4*hid)

    # Remaining (pre-ReLU) biases, concatenated with 8-aligned offsets.
    b1p = jnp.pad(params['b1'], (0, hid_p - hid)) if hid_p != hid else params['b1']
    bias = jnp.concatenate([b1p, jnp.tile(params['b2'], 4)]).reshape(-1, 1).astype(f32)

    # ---- grid: 1 step (v5e/v6e) or 2 image-aligned lane chunks (v7x) ---------
    G = _num_lane_chunks(N, HW)
    chunk = L // G

    # Per-image roll masks, tiled over the images of one chunk (same per chunk).
    idx = np.arange(HW)
    m_col = (idx % W != W - 1).astype(np.float32)
    m_row = (idx < (H - 1) * W).astype(np.float32)
    mask = jnp.asarray(np.tile(np.stack([m_col, m_row, m_col * m_row]),
                               (1, N // G)))                          # (3, chunk)

    kern = functools.partial(_fused_upsampling_kernel, hid=hid, hid_p=hid_p, W=W)
    full = lambda g: (0, 0)
    out = pl.pallas_call(
        kern,
        out_shape=jax.ShapeDtypeStruct((4 * cout, L), jnp.float32),
        grid=(G,),
        in_specs=[
            pl.BlockSpec((4 * cout, chunk), lambda g: (0, g)),        # main branch (upsampled)
            pl.BlockSpec((Cin, chunk), lambda g: (0, g)),             # x (deconv branch)
            pl.BlockSpec((hid_p, Cin), full),                         # w1 (scale folded)
            pl.BlockSpec((4 * hid, 4 * hid_p), full),                 # wde (polyphase)
            pl.BlockSpec((4 * cout, 4 * hid), full),                  # w3 block-diag
            pl.BlockSpec((hid_p + 4 * hid, 1), full),                 # biases [b1 | b2]
            pl.BlockSpec((3, chunk), full),                           # roll masks
        ],
        out_specs=pl.BlockSpec((4 * cout, chunk), lambda g: (0, g)),
        compiler_params=pltpu.CompilerParams(dimension_semantics=("parallel",)),
    )(up, x_flat, w1s, wde, w3bd, bias, mask)

    # Interleave the 4 phases back to NCHW (wrapper-side layout plumbing).
    out = out.reshape(2, 2, cout, N, H, W)
    out = jnp.transpose(out, (3, 2, 4, 0, 5, 1)).reshape(N, cout, 2 * H, 2 * W)
    return out


def make_params(key, cin, cout):
    hid = cin // 4
    ks = jax.random.split(key, 8)

    def bn_fold(kk, c):
        kg, kb, km, kv = jax.random.split(kk, 4)
        gamma = 1.0 + 0.1 * jax.random.normal(kg, (c,), jnp.float32)
        beta = 0.1 * jax.random.normal(kb, (c,), jnp.float32)
        mean = 0.1 * jax.random.normal(km, (c,), jnp.float32)
        var = jax.random.uniform(kv, (c,), jnp.float32, minval=0.5, maxval=1.5)
        scale = gamma * jax.lax.rsqrt(var + 1e-5)
        bias = beta - mean * scale
        return scale, bias

    p = {}
    # deconv[0]: Conv2d(cin, hid, 1) weight (hid, cin)
    p['w1'] = jax.random.normal(ks[0], (hid, cin), jnp.float32) / np.sqrt(cin)
    p['s1'], p['b1'] = bn_fold(ks[1], hid)
    # deconv[1]: ConvTranspose2d(hid, hid, 3, s=2, p=1, op=1) weight (Cin, Cout, 3, 3)
    p['wt2'] = jax.random.normal(ks[2], (hid, hid, 3, 3), jnp.float32) / np.sqrt(hid * 9.0)
    p['s2'], p['b2'] = bn_fold(ks[3], hid)
    # deconv[2]: Conv2d(hid, cout, 1), no activation
    p['w3'] = jax.random.normal(ks[4], (cout, hid), jnp.float32) / np.sqrt(hid)
    p['s3'], p['b3'] = bn_fold(ks[5], cout)
    # conv: Conv2d(cin, cout, 1), no activation
    p['w4'] = jax.random.normal(ks[6], (cout, cin), jnp.float32) / np.sqrt(cin)
    p['s4'], p['b4'] = bn_fold(ks[7], cout)
    return p


# ---------------------------- pure-JAX reference ------------------------------

def ref_forward(x_nchw, pool_nchw, params):
    x = x_nchw.astype(jnp.float32)
    pool = pool_nchw.astype(jnp.float32)
    N, Cin, H, W = x.shape

    def affine(v, s, b):
        return v * s[None, :, None, None] + b[None, :, None, None]

    h1 = jnp.einsum('oi,nihw->nohw', params['w1'], x)
    h1 = jnp.maximum(affine(h1, params['s1'], params['b1']), 0.0)
    # ConvTranspose2d(3, s=2, p=1, op=1) == dilate-by-2 + pad (1,2) + flipped direct conv
    w2 = jnp.transpose(jnp.flip(params['wt2'], (2, 3)), (1, 0, 2, 3))   # OIHW
    h2 = jax.lax.conv_general_dilated(
        h1, w2, window_strides=(1, 1), padding=((1, 2), (1, 2)),
        lhs_dilation=(2, 2), dimension_numbers=('NCHW', 'OIHW', 'NCHW'))
    h2 = jnp.maximum(affine(h2, params['s2'], params['b2']), 0.0)
    xd = affine(jnp.einsum('oi,nihw->nohw', params['w3'], h2),
                params['s3'], params['b3'])

    y = affine(jnp.einsum('oi,nihw->nohw', params['w4'], x + pool),
               params['s4'], params['b4'])
    a_h = jnp.asarray(interp_matrix_np(H, 2 * H))
    a_w = jnp.asarray(interp_matrix_np(W, 2 * W))
    up = jnp.einsum('ph,qw,nchw->ncpq', a_h, a_w, y)
    return jnp.maximum(up + xd, 0.0)


# ------------------------------------ main ------------------------------------

if __name__ == "__main__":
    key = jax.random.PRNGKey(0)
    kx, kp, kw = jax.random.split(key, 3)

    N, Cin, H, W = 2, 16, 16, 16      # in_channels=16 -> hid_channels=4
    Cout = 8

    x = jax.random.normal(kx, (N, Cin, H, W), jnp.float32)
    pool_feat = jax.random.normal(kp, (N, Cin, H, W), jnp.float32)
    params = make_params(kw, Cin, Cout)

    out = jax.block_until_ready(upsampling_block_forward(x, pool_feat, params))
    assert out.shape == (N, Cout, 2 * H, 2 * W), out.shape

    ref = ref_forward(x, pool_feat, params)
    # Kernel feeds the MXU bf16 operands (f32 accumulation); reference is f32.
    np.testing.assert_allclose(np.asarray(out), np.asarray(ref), rtol=5e-2, atol=5e-2)

    print("KERNEL_OK")
</pallas_src>

<mosaic_0001>
module attributes {stable_mosaic.version = 11 : i64} {
  func.func @_fused_upsampling_kernel(%arg0: i32, %arg1: memref<32x512xbf16, #tpu.memory_space<vmem>>, %arg2: memref<16x512xbf16, #tpu.memory_space<vmem>>, %arg3: memref<8x16xbf16, #tpu.memory_space<vmem>>, %arg4: memref<16x32xbf16, #tpu.memory_space<vmem>>, %arg5: memref<32x16xbf16, #tpu.memory_space<vmem>>, %arg6: memref<24x1xf32, #tpu.memory_space<vmem>>, %arg7: memref<3x512xf32, #tpu.memory_space<vmem>>, %arg8: memref<32x512xf32, #tpu.memory_space<vmem>>) attributes {dimension_semantics = [#tpu.dimension_semantics<parallel>], iteration_bounds = array<i64: 1>, scalar_prefetch = 0 : i64, scratch_operands = 0 : i64, tpu.core_type = #tpu.core_type<tc>, window_params = [{transform_indices = @transform_0, window_bounds = array<i64: 32, 512>}, {transform_indices = @transform_1, window_bounds = array<i64: 16, 512>}, {pipeline_mode = #tpu.pipeline_mode<synchronous>, transform_indices = @transform_2, window_bounds = array<i64: 8, 16>}, {pipeline_mode = #tpu.pipeline_mode<synchronous>, transform_indices = @transform_3, window_bounds = array<i64: 16, 32>}, {pipeline_mode = #tpu.pipeline_mode<synchronous>, transform_indices = @transform_4, window_bounds = array<i64: 32, 16>}, {pipeline_mode = #tpu.pipeline_mode<synchronous>, transform_indices = @transform_5, window_bounds = array<i64: 24, 1>}, {pipeline_mode = #tpu.pipeline_mode<synchronous>, transform_indices = @transform_6, window_bounds = array<i64: 3, 512>}, {transform_indices = @transform_7, window_bounds = array<i64: 32, 512>}]} {
    %c0 = arith.constant 0 : index
    %c0_0 = arith.constant 0 : index
    %0 = vector.load %arg3[%c0, %c0_0] : memref<8x16xbf16, #tpu.memory_space<vmem>>, vector<8x16xbf16>
    %c0_1 = arith.constant 0 : index
    %c0_2 = arith.constant 0 : index
    %1 = vector.load %arg2[%c0_1, %c0_2] : memref<16x512xbf16, #tpu.memory_space<vmem>>, vector<16x512xbf16>
    %cst = arith.constant dense<0.000000e+00> : vector<8x512xf32>
    %2 = tpu.matmul %0, %1, %cst {dimension_numbers = #tpu.dot_dimension_numbers<[1], [0], [0], [1], [0, 0, 1, 1], [], []>} : vector<8x16xbf16>, vector<16x512xbf16>, vector<8x512xf32> -> vector<8x512xf32>
    %c0_3 = arith.constant 0 : index
    %c0_4 = arith.constant 0 : index
    %3 = vector.load %arg6[%c0_3, %c0_4] : memref<24x1xf32, #tpu.memory_space<vmem>>, vector<8x1xf32>
    %4 = vector.broadcast %3 : vector<8x1xf32> to vector<8x512xf32>
    %5 = arith.addf %2, %4 : vector<8x512xf32>
    %cst_5 = arith.constant 0.000000e+00 : f32
    %6 = vector.broadcast %cst_5 : f32 to vector<8x512xf32>
    %7 = arith.maximumf %5, %6 : vector<8x512xf32>
    %c0_6 = arith.constant 0 : index
    %c0_7 = arith.constant 0 : index
    %8 = vector.load %arg7[%c0_6, %c0_7] : memref<3x512xf32, #tpu.memory_space<vmem>>, vector<1x512xf32>
    %c1 = arith.constant 1 : index
    %c0_8 = arith.constant 0 : index
    %9 = vector.load %arg7[%c1, %c0_8] : memref<3x512xf32, #tpu.memory_space<vmem>>, vector<1x512xf32>
    %c2 = arith.constant 2 : index
    %c0_9 = arith.constant 0 : index
    %10 = vector.load %arg7[%c2, %c0_9] : memref<3x512xf32, #tpu.memory_space<vmem>>, vector<1x512xf32>
    %c511_i32 = arith.constant 511 : i32
    %11 = tpu.dynamic_rotate %7 by %c511_i32 dim 1 : vector<8x512xf32>, i32 -> vector<8x512xf32>
    %12 = vector.broadcast %8 : vector<1x512xf32> to vector<8x512xf32>
    %13 = arith.mulf %11, %12 : vector<8x512xf32>
    %c496_i32 = arith.constant 496 : i32
    %14 = tpu.dynamic_rotate %7 by %c496_i32 dim 1 : vector<8x512xf32>, i32 -> vector<8x512xf32>
    %15 = vector.broadcast %9 : vector<1x512xf32> to vector<8x512xf32>
    %16 = arith.mulf %14, %15 : vector<8x512xf32>
    %c495_i32 = arith.constant 495 : i32
    %17 = tpu.dynamic_rotate %7 by %c495_i32 dim 1 : vector<8x512xf32>, i32 -> vector<8x512xf32>
    %18 = vector.broadcast %10 : vector<1x512xf32> to vector<8x512xf32>
    %19 = arith.mulf %17, %18 : vector<8x512xf32>
    %20 = tpu.concatenate %7, %13, %16, %19 in 0 : vector<8x512xf32>, vector<8x512xf32>, vector<8x512xf32>, vector<8x512xf32> -> vector<32x512xf32>
    %21 = arith.truncf %20 : vector<32x512xf32> to vector<32x512xbf16>
    %c0_10 = arith.constant 0 : index
    %c0_11 = arith.constant 0 : index
    %22 = vector.load %arg4[%c0_10, %c0_11] : memref<16x32xbf16, #tpu.memory_space<vmem>>, vector<16x32xbf16>
    %cst_12 = arith.constant dense<0.000000e+00> : vector<16x512xf32>
    %23 = tpu.matmul %22, %21, %cst_12 {dimension_numbers = #tpu.dot_dimension_numbers<[1], [0], [0], [1], [0, 0, 1, 1], [], []>} : vector<16x32xbf16>, vector<32x512xbf16>, vector<16x512xf32> -> vector<16x512xf32>
    %c8 = arith.constant 8 : index
    %c0_13 = arith.constant 0 : index
    %24 = vector.load %arg6[%c8, %c0_13] : memref<24x1xf32, #tpu.memory_space<vmem>>, vector<16x1xf32>
    %25 = vector.broadcast %24 : vector<16x1xf32> to vector<16x512xf32>
    %26 = arith.addf %23, %25 : vector<16x512xf32>
    %cst_14 = arith.constant 0.000000e+00 : f32
    %27 = vector.broadcast %cst_14 : f32 to vector<16x512xf32>
    %28 = arith.maximumf %26, %27 : vector<16x512xf32>
    %c0_15 = arith.constant 0 : index
    %c0_16 = arith.constant 0 : index
    %29 = vector.load %arg5[%c0_15, %c0_16] : memref<32x16xbf16, #tpu.memory_space<vmem>>, vector<32x16xbf16>
    %30 = arith.truncf %28 : vector<16x512xf32> to vector<16x512xbf16>
    %cst_17 = arith.constant dense<0.000000e+00> : vector<32x512xf32>
    %31 = tpu.matmul %29, %30, %cst_17 {dimension_numbers = #tpu.dot_dimension_numbers<[1], [0], [0], [1], [0, 0, 1, 1], [], []>} : vector<32x16xbf16>, vector<16x512xbf16>, vector<32x512xf32> -> vector<32x512xf32>
    %c0_18 = arith.constant 0 : index
    %c0_19 = arith.constant 0 : index
    %32 = vector.load %arg1[%c0_18, %c0_19] : memref<32x512xbf16, #tpu.memory_space<vmem>>, vector<32x512xbf16>
    %33 = arith.extf %32 : vector<32x512xbf16> to vector<32x512xf32>
    %34 = arith.addf %33, %31 : vector<32x512xf32>
    %cst_20 = arith.constant 0.000000e+00 : f32
    %35 = vector.broadcast %cst_20 : f32 to vector<32x512xf32>
    %36 = arith.maximumf %34, %35 : vector<32x512xf32>
    %c0_21 = arith.constant 0 : index
    %c0_22 = arith.constant 0 : index
    %37 = vector.load %arg8[%c0_21, %c0_22] : memref<32x512xf32, #tpu.memory_space<vmem>>, vector<32x512xf32>
    tpu.vector_store %arg8[%c0_21, %c0_22], %36 {strides = array<i32>} : memref<32x512xf32, #tpu.memory_space<vmem>>, vector<32x512xf32>,
    return
  }
  func.func @transform_0(%arg0: i32) -> (i32, i32) {
    %c0_i32 = arith.constant 0 : i32
    %c0_i32_0 = arith.constant 0 : i32
    return %c0_i32, %arg0 : i32, i32
  }
  func.func @transform_1(%arg0: i32) -> (i32, i32) {
    %c0_i32 = arith.constant 0 : i32
    %c0_i32_0 = arith.constant 0 : i32
    return %c0_i32, %arg0 : i32, i32
  }
  func.func @transform_2(%arg0: i32) -> (i32, i32) {
    %c0_i32 = arith.constant 0 : i32
    %c0_i32_0 = arith.constant 0 : i32
    %c0_i32_1 = arith.constant 0 : i32
    return %c0_i32, %c0_i32_0 : i32, i32
  }
  func.func @transform_3(%arg0: i32) -> (i32, i32) {
    %c0_i32 = arith.constant 0 : i32
    %c0_i32_0 = arith.constant 0 : i32
    %c0_i32_1 = arith.constant 0 : i32
    return %c0_i32, %c0_i32_0 : i32, i32
  }
  func.func @transform_4(%arg0: i32) -> (i32, i32) {
    %c0_i32 = arith.constant 0 : i32
    %c0_i32_0 = arith.constant 0 : i32
    %c0_i32_1 = arith.constant 0 : i32
    return %c0_i32, %c0_i32_0 : i32, i32
  }
  func.func @transform_5(%arg0: i32) -> (i32, i32) {
    %c0_i32 = arith.constant 0 : i32
    %c0_i32_0 = arith.constant 0 : i32
    %c0_i32_1 = arith.constant 0 : i32
    return %c0_i32, %c0_i32_0 : i32, i32
  }
  func.func @transform_6(%arg0: i32) -> (i32, i32) {
    %c0_i32 = arith.constant 0 : i32
    %c0_i32_0 = arith.constant 0 : i32
    %c0_i32_1 = arith.constant 0 : i32
    return %c0_i32, %c0_i32_0 : i32, i32
  }
  func.func @transform_7(%arg0: i32) -> (i32, i32) {
    %c0_i32 = arith.constant 0 : i32
    %c0_i32_0 = arith.constant 0 : i32
    return %c0_i32, %arg0 : i32, i32
  }
}

</mosaic_0001>

<bundles_post_ra>
// kernel: tile.28
= control target key start
LH: loop header
LB: loop body
LE: loop exit
PB: predicated region body
PF: predicated region fallthrough
CT: control target
= control target key end

     0   :  { %2 = vsyncpa [#allocation1], 0  ;;  %s42_s6 = smov [#allocation0]   ;;  %s59_s0 = inlined_call_operand.hbm [shape: f32[4], index: 0, kind: input, shape index: {}]   ;;  %s60_s1 = inlined_call_operand.vmem [shape: f32[4,4], index: 1, kind: output, shape index: {}]  }
   0x1   :  { %s9_s7 = sshll.u32 %s42_s6, 4  ;;  %s10_s7 = int_to_ptr.vmem [resolvable:$true] %s9_s7 }
   0x2   :  { %s28_s8 = scalar_lea.vmem %s10_s7, 16  ;;  %s32_s9 = scalar_lea.vmem %s10_s7, 32 }
   0x3   :  { %p29_p0 = scmp.ne.s32.totalorder %s10_s7, %s28_s8  ;;  %p33_p1 = scmp.lt.s32.totalorder %s10_s7, %s10_s7 }
   0x4   :  { %p34_p2 = scmp.lt.s32.totalorder %s32_s9, %s28_s8 }
   0x6   :  { %p35_p3 = por %p34_p2, %p33_p1 }
   0x8   :  { %p36_p4 = pnand %p35_p3, %p29_p0 }
   0xa   :  { %39 = shalt.err (!%p36_p4)
}
   0xb   :  { %12 = dma.hbm_to_vmem [thread:$0]  %s59_s0, 16, %s10_s7, [#allocation1]  }
   0xc   :  { %40 = dma.done.wait [#allocation1], 16  }
   0xd   :  { %41 = vsyncadd [#allocation1], 4294967280  ;;  %v16_v0 = vld [vmem:[#allocation0] ss:$0 sm:$0xff] }
   0xe   :  { %17 = vst [vmem:[%s60_s1] sm:$0xf] %v16_v0 }
   0xf   :  { %18 = vsyncpa [#allocation1], 1 }

// kernel: tile.29
= control target key start
LH: loop header
LB: loop body
LE: loop exit
PB: predicated region body
PF: predicated region fallthrough
CT: control target
= control target key end

     0   :  { %vm8_vm0 = vcmask 31744   ;;  %s40_s8 = smov 4   ;;  %s41_s9 = smov 8   ;;  %vm14_vm1 = vcmask 130144   ;;  %vm20_vm2 = vcmask 97344   ;;  %vm26_vm3 = vcmask 64544   ;;  %s58_s0 = inlined_call_operand.vmem [shape: f32[4,4], index: 0, kind: input, shape index: {}]   ;;  %s59_s1 = inlined_call_operand.vmem [shape: f32[16], index: 1, kind: output, shape index: {}]  }
   0x1   :  { %v5_v0 = vld [vmem:[%s58_s0] sm:$0xf]  ;;  %s39_s0 = smov 12  }
   0x2   :  { %6 = vst [vmem:[#allocation1] sm:$0xf] %v5_v0 }
   0x9   :  { %v11_v1 = vld [vmem:[#allocation1 + $0x3] sm:$0x1]   ;;  %v23_v2 = vld [vmem:[#allocation1 + $0x1] sm:$0x1]   ;;  %v7_v3 = vld [vmem:[#allocation1] sm:$0x1]  }
   0xa   :  { %12 = vrot.lane.b32.xlu0 %v11_v1, %s39_s0  ;;  %24 = vrot.lane.b32.xlu1 %v23_v2, %s40_s8  ;;  %v17_v4 = vld [vmem:[#allocation1 + $0x2] sm:$0x1]   ;;  %9 = vst.msk [vmem:[#allocation0] sm:$0x1] %vm8_vm0, %v7_v3  }
   0xe   :  { %18 = vrot.lane.b32.xlu0 %v17_v4, %s41_s9 }
  0x7c   :  { %v13_v5 = vpop.permute.xlu0 %12   ;;  %v25_v6 = vpop.permute.xlu1 %24  }
  0x7d   :  { %15 = vst.msk [vmem:[#allocation0] sm:$0x1] %vm14_vm1, %v13_v5  }
  0x80   :  { %v19_v7 = vpop.permute.xlu0 %18  }
  0x81   :  { %21 = vst.msk [vmem:[#allocation0] sm:$0x1] %vm20_vm2, %v19_v7  }
  0x82   :  { %27 = vst.msk [vmem:[#allocation0] sm:$0x1] %vm26_vm3, %v25_v6  }
  0x89   :  { %v32_v8 = vld [vmem:[#allocation0] sm:$0x1] }
  0x8a   :  { %35 = vst [vmem:[%s59_s1] sm:$0x1] %v32_v8 }

// kernel: tile.23
= control target key start
LH: loop header
LB: loop body
LE: loop exit
PB: predicated region body
PF: predicated region fallthrough
CT: control target
= control target key end

     0   :  { %2 = vsyncpa [#allocation1], 0  ;;  %s42_s6 = smov [#allocation0]   ;;  %s59_s0 = inlined_call_operand.hbm [shape: f32[8], index: 0, kind: input, shape index: {}]   ;;  %s60_s1 = inlined_call_operand.vmem [shape: f32[4,8], index: 1, kind: output, shape index: {}]  }
   0x1   :  { %s9_s7 = sshll.u32 %s42_s6, 4  ;;  %s10_s7 = int_to_ptr.vmem [resolvable:$true] %s9_s7 }
   0x2   :  { %s28_s8 = scalar_lea.vmem %s10_s7, 16  ;;  %s32_s9 = scalar_lea.vmem %s10_s7, 32 }
   0x3   :  { %p29_p0 = scmp.ne.s32.totalorder %s10_s7, %s28_s8  ;;  %p33_p1 = scmp.lt.s32.totalorder %s10_s7, %s10_s7 }
   0x4   :  { %p34_p2 = scmp.lt.s32.totalorder %s32_s9, %s28_s8 }
   0x6   :  { %p35_p3 = por %p34_p2, %p33_p1 }
   0x8   :  { %p36_p4 = pnand %p35_p3, %p29_p0 }
   0xa   :  { %39 = shalt.err (!%p36_p4)
}
   0xb   :  { %12 = dma.hbm_to_vmem [thread:$0]  %s59_s0, 16, %s10_s7, [#allocation1]  }
   0xc   :  { %40 = dma.done.wait [#allocation1], 16  }
   0xd   :  { %41 = vsyncadd [#allocation1], 4294967280  ;;  %v16_v0 = vld [vmem:[#allocation0] ss:$0 sm:$0xff] }
   0xe   :  { %17 = vst [vmem:[%s60_s1] sm:$0xf] %v16_v0 }
   0xf   :  { %18 = vsyncpa [#allocation1], 1 }

// kernel: mul.43
= control target key start
LH: loop header
LB: loop body
LE: loop exit
PB: predicated region body
PF: predicated region fallthrough
CT: control target
= control target key end

     0   :  { %vm8_vm0 = vcmask 64512   ;;  %s40_s8 = smov 8   ;;  %s41_s9 = smov 16   ;;  %vm14_vm1 = vcmask 261312   ;;  %vm20_vm2 = vcmask 195712   ;;  %vm26_vm3 = vcmask 130112   ;;  %s58_s0 = inlined_call_operand.vmem [shape: f32[4,8], index: 0, kind: input, shape index: {}]   ;;  %s59_s1 = inlined_call_operand.vmem [shape: f32[32], index: 1, kind: output, shape index: {}]  }
   0x1   :  { %v5_v0 = vld [vmem:[%s58_s0] sm:$0xf]  ;;  %s39_s0 = smov 24  }
   0x2   :  { %6 = vst [vmem:[#allocation1] sm:$0xf] %v5_v0 }
   0x9   :  { %v11_v1 = vld [vmem:[#allocation1 + $0x3] sm:$0x1]   ;;  %v23_v2 = vld [vmem:[#allocation1 + $0x1] sm:$0x1]   ;;  %v7_v3 = vld [vmem:[#allocation1] sm:$0x1]  }
   0xa   :  { %12 = vrot.lane.b32.xlu0 %v11_v1, %s39_s0  ;;  %24 = vrot.lane.b32.xlu1 %v23_v2, %s40_s8  ;;  %v17_v4 = vld [vmem:[#allocation1 + $0x2] sm:$0x1]   ;;  %9 = vst.msk [vmem:[#allocation0] sm:$0x1] %vm8_vm0, %v7_v3  }
   0xe   :  { %18 = vrot.lane.b32.xlu0 %v17_v4, %s41_s9 }
  0x7c   :  { %v13_v5 = vpop.permute.xlu0 %12   ;;  %v25_v6 = vpop.permute.xlu1 %24  }
  0x7d   :  { %15 = vst.msk [vmem:[#allocation0] sm:$0x1] %vm14_vm1, %v13_v5  }
  0x80   :  { %v19_v7 = vpop.permute.xlu0 %18  }
  0x81   :  { %21 = vst.msk [vmem:[#allocation0] sm:$0x1] %vm20_vm2, %v19_v7  }
  0x82   :  { %27 = vst.msk [vmem:[#allocation0] sm:$0x1] %vm26_vm3, %v25_v6  }
  0x89   :  { %v32_v8 = vld [vmem:[#allocation0] sm:$0x1] }
  0x8a   :  { %35 = vst [vmem:[%s59_s1] sm:$0x1] %v32_v8 }

// kernel: upsampling_block_forward.1
= control target key start
LH: loop header
LB: loop body
LE: loop exit
PB: predicated region body
PF: predicated region fallthrough
CT: control target
= control target key end

     0   :  { %v632_v1 = vmov 0   ;;  %vm58_vm0 = vcmask 130048   ;;  %s635_s13 = smov 127   ;;  %v161_v26 = vlaneseq  ;;  %vm296_vm4 = vcmask 261120   ;;  %s838_s1 = inlined_call_operand.vmem [shape: bf16[16,512], index: 1, kind: input, shape index: {}]   ;;  %s839_s5 = inlined_call_operand.vmem [shape: f32[24,1], index: 5, kind: input, shape index: {}]   ;;  %s840_s2 = inlined_call_operand.vmem [shape: bf16[8,16], index: 2, kind: input, shape index: {}]   ;;  %s841_s3 = inlined_call_operand.vmem [shape: bf16[16,32], index: 3, kind: input, shape index: {}]   ;;  %s842_s6 = inlined_call_operand.vmem [shape: f32[3,512], index: 6, kind: input, shape index: {}]   ;;  %s843_s4 = inlined_call_operand.vmem [shape: bf16[32,16], index: 4, kind: input, shape index: {}]   ;;  %s844_s0 = inlined_call_operand.vmem [shape: bf16[32,512], index: 0, kind: input, shape index: {}]   ;;  %s845_s7 = inlined_call_operand.vmem [shape: f32[32,512], index: 7, kind: output, shape index: {}]  }
   0x1   :  { %v623_v0 = vld [vmem:[%s838_s1 + $0x4] ss:$16 sps:$4 sm:$0xff]   ;;  %94 = vmatprep.mubr.bf16.mxu0 %v632_v1  ;;  %135 = vmatprep.mubr.bf16.mxu1 %v632_v1  ;;  %v625_v2 = vld [vmem:[%s838_s1 + $0xc] ss:$16 sps:$4 sm:$0xff]   ;;  %v627_v3 = vld [vmem:[%s838_s1] ss:$16 sps:$4 sm:$0xff]  }
   0x2   :  { %621 = vset.pattern.permute.xlu0 %v632_v1  ;;  %622 = vset.pattern.permute.xlu1 %v632_v1  ;;  %v628_v4 = vld [vmem:[%s838_s1 + $0x8] ss:$16 sps:$4 sm:$0xff]   ;;  %v32_v5 = vld [vmem:[%s839_s5] sm:$0xff]  ;;  %s633_s1 = smov 112   ;;  %v280_v24 = vld [vmem:[%s839_s5 + $0x10] sm:$0xff]  ;;  %v170_v29 = vshrl.u32 %v161_v26, 7 }
   0x3   :  { %76 = vmatprep.subr.bf16.mxu0 %v623_v0  ;;  %117 = vmatprep.subr.bf16.mxu1 %v625_v2  ;;  %v27_v6 = vld [vmem:[%s840_s2] sm:$0xf]  ;;  %s634_s2 = smov 111   ;;  %v279_v25 = vld [vmem:[%s839_s5 + $0x8] sm:$0xff]  ;;  %v162_v30 = vand.u32 127, %v161_v26 }
   0x4   :  { %77 = vmatpush1.bf16.msra.mxu0 %v627_v3  ;;  %118 = vmatpush1.bf16.msra.mxu1 %v628_v4  ;;  %v179_v33 = vsub.s32 2, %v170_v29  ;;  %v606_v34 = vld [vmem:[%s842_s6 + $0x1] ss:$4 sm:$0xf]  ;;  %v183_v35 = vsub.s32 3, %v170_v29  ;;  %v171_v37 = vsub.s32 0, %v170_v29 }
   0x5   :  { %35 = vperm.xlu0 %621, %v32_v5   ;;  %vm201_vm1 = vcmp.lt.s32.totalorder %v162_v30, 112  ;;  %v175_v38 = vsub.s32 1, %v170_v29  ;;  %v607_v41 = vld [vmem:[%s842_s6 + $0x2] ss:$4 sm:$0xf]  ;;  %vm239_vm2 = vcmp.lt.s32.totalorder %v162_v30, 111 }
   0x6   :  { %v218_v40 = vrot.slane %v606_v34, %v179_v33  ;;  %v222_v42 = vrot.slane %v606_v34, %v183_v35  ;;  %v256_v44 = vrot.slane %v607_v41, %v179_v33  ;;  %v260_v45 = vrot.slane %v607_v41, %v183_v35  ;;  %v148_v52 = vld [vmem:[%s842_s6] ss:$4 sm:$0xf] }
   0x7   :  { %604 = vmatmul.mubr.msk.bf16.vlgmr.msra.gmra.mxu0 %vm58_vm0, %v27_v6  ;;  %605 = vmatmul.mubr.msk.bf16.vlgmr.msra.gmra.mxu1 %vm58_vm0, %v27_v6  ;;  %v248_v47 = vrot.slane %v607_v41, %v171_v37  ;;  %v252_v48 = vrot.slane %v607_v41, %v175_v38  ;;  %v210_v51 = vrot.slane %v606_v34, %v171_v37  ;;  %vm163_vm3 = vcmp.lt.s32.totalorder %v162_v30, 127  ;;  %v629_v30 = vld [vmem:[%s841_s3] sm:$0xff]  }
   0x8   :  { %332 = vmatprep.mubr.bf16.mxu0 %v632_v1  ;;  %375 = vmatprep.mubr.bf16.mxu1 %v632_v1  ;;  %v214_v56 = vrot.slane %v606_v34, %v175_v38  ;;  %v172_v62 = vrot.slane %v148_v52, %v171_v37  ;;  %v176_v4 = vrot.slane %v148_v52, %v175_v38 }
   0x9   :  { %v180_v5 = vrot.slane %v148_v52, %v179_v33 }
  0x80   :  { %v36_v7 = vpop.permute.xlu0 %35 }
  0xc7   :  { %v96_v8 = vpop.f32.mrf.mxu0  ;;  %v137_v9 = vpop.f32.mrf.mxu1 }
  0xc8   :  { %v97_v10 = vadd.f32 %v96_v8, %v36_v7  ;;  %v138_v11 = vadd.f32 %v137_v9, %v36_v7  ;;  %v184_v9 = vrot.slane %v148_v52, %v183_v35 }
  0xc9   :  { %v98_v12 = vpop.f32.mrf.mxu0  ;;  %v139_v13 = vpop.f32.mrf.mxu1 }
  0xca   :  { %v702_v14 = vmax.f32 %v97_v10, 0.0  ;;  %v704_v15 = vmax.f32 %v138_v11, 0.0  ;;  %v140_v16 = vadd.f32 %v139_v13, %v36_v7  ;;  %v99_v21 = vadd.f32 %v98_v12, %v36_v7 }
  0xcb   :  { %v100_v17 = vpop.f32.mrf.mxu0  ;;  %v141_v18 = vpop.f32.mrf.mxu1 }
  0xcc   :  { %197 = vrot.lane.b32.xlu1 %v704_v15, %s633_s1  ;;  %193 = vrot.lane.b32.xlu0 %v702_v14, %s633_s1  ;;  %v708_v22 = vmax.f32 %v140_v16, 0.0  ;;  %v712_v23 = vmax.f32 %v99_v21, 0.0 }
  0xcd   :  { %v101_v19 = vpop.f32.mrf.mxu0  ;;  %v142_v20 = vpop.f32.mrf.mxu1 }
  0xd0   :  { %231 = vrot.lane.b32.xlu1 %v702_v14, %s634_s2  ;;  %199 = vrot.lane.b32.xlu0 %v708_v22, %s633_s1 }
  0xd4   :  { %235 = vrot.lane.b32.xlu1 %v704_v15, %s634_s2  ;;  %233 = vrot.lane.b32.xlu0 %v712_v23, %s634_s2 }
  0xd8   :  { %153 = vrot.lane.b32.xlu1 %v702_v14, %s635_s13  ;;  %237 = vrot.lane.b32.xlu0 %v708_v22, %s634_s2 }
  0xdc   :  { %195 = vrot.lane.b32.xlu1 %v712_v23, %s633_s1  ;;  %155 = vrot.lane.b32.xlu0 %v712_v23, %s635_s13 }
  0xe0   :  { %157 = vrot.lane.b32.xlu1 %v704_v15, %s635_s13  ;;  %159 = vrot.lane.b32.xlu0 %v708_v22, %s635_s13 }
  0xe4   :  { %288 = vperm.xlu0 %621, %v280_v24   ;;  %283 = vperm.xlu1 %622, %v279_v25  }
 0x13e   :  { %v198_v27 = vpop.permute.xlu1 %197  ;;  %v194_v28 = vpop.permute.xlu0 %193 }
 0x142   :  { %v232_v31 = vpop.permute.xlu1 %231  ;;  %v200_v32 = vpop.permute.xlu0 %199 }
 0x143   :  { %v202_v43 = vsel %vm201_vm1, %v198_v27, %v200_v32  ;;  %v205_v46 = vsel %vm201_vm1, %v200_v32, %v194_v28 }
 0x144   :  { %v229_v53 = vmul.f32 %v218_v40, %v202_v43  ;;  %v230_v57 = vmul.f32 %v222_v42, %v205_v46 }
 0x146   :  { %v236_v36 = vpop.permute.xlu1 %235  ;;  %v234_v39 = vpop.permute.xlu0 %233 }
 0x147   :  { %v242_v58 = vsel %vm239_vm2, %v232_v31, %v234_v39  ;;  %v241_v61 = vsel %vm239_vm2, %v234_v39, %v236_v36 }
 0x148   :  { %v265_v6 = vmul.f32 %v248_v47, %v242_v58  ;;  %v266_v10 = vmul.f32 %v252_v48, %v241_v61  ;;  %v631_v61 = vld [vmem:[%s843_s4 + $0x8] sm:$0xff]  }
 0x14a   :  { %v154_v49 = vpop.permute.xlu1 %153  ;;  %v238_v50 = vpop.permute.xlu0 %237 }
 0x14b   :  { %v240_v54 = vsel %vm239_vm2, %v236_v36, %v238_v50  ;;  %v243_v55 = vsel %vm239_vm2, %v238_v50, %v232_v31 }
 0x14c   :  { %v267_v59 = vmul.f32 %v256_v44, %v240_v54  ;;  %v268_v60 = vmul.f32 %v260_v45, %v243_v55 }
 0x14e   :  { %v275_v63 = vpack.c.bf16 %v267_v59, %v229_v53  ;;  %v196_v0 = vpop.permute.xlu1 %195  ;;  %v156_v2 = vpop.permute.xlu0 %155  ;;  %v276_v3 = vpack.c.bf16 %v268_v60, %v230_v57  ;;  %v630_v60 = vld [vmem:[%s843_s4] sm:$0xff]  }
 0x14f   :  { %v203_v7 = vsel %vm201_vm1, %v196_v0, %v198_v27  ;;  %v204_v8 = vsel %vm201_vm1, %v194_v28, %v196_v0  ;;  %v166_v13 = vsel %vm163_vm3, %v154_v49, %v156_v2 }
 0x150   :  { %v227_v11 = vmul.f32 %v210_v51, %v204_v8  ;;  %v228_v12 = vmul.f32 %v214_v56, %v203_v7  ;;  %355 = vmatprep.subr.bf16.mxu1 %v276_v3  ;;  %v189_v20 = vmul.f32 %v172_v62, %v166_v13  ;;  %v524_v62 = vld [vmem:[%s844_s0] sm:$0xff]  ;;  %v527_v3 = vld [vmem:[%s844_s0 + $0x18] sm:$0xff]  ;;  %v529_v13 = vld [vmem:[%s844_s0 + $0x28] sm:$0xff] }
 0x151   :  { %356 = vmatpush1.bf16.msra.mxu1 %v275_v63  ;;  %v525_v63 = vld [vmem:[%s844_s0 + $0x8] sm:$0xff]  ;;  %v532_v0 = vunpack.c.l.bf16 %v524_v62 }
 0x152   :  { %v273_v16 = vpack.c.bf16 %v265_v6, %v227_v11  ;;  %v158_v17 = vpop.permute.xlu1 %157  ;;  %v160_v18 = vpop.permute.xlu0 %159  ;;  %v274_v19 = vpack.c.bf16 %v266_v10, %v228_v12  ;;  %v269_v33 = vpack.c.bf16 %v189_v20, %v702_v14  ;;  %v538_v11 = vunpack.c.l.bf16 %v527_v3  ;;  %v528_v12 = vld [vmem:[%s844_s0 + $0x20] sm:$0xff] }
 0x153   :  { %v165_v21 = vsel %vm163_vm3, %v156_v2, %v158_v17  ;;  %v164_v24 = vsel %vm163_vm3, %v158_v17, %v160_v18  ;;  %v167_v25 = vsel %vm163_vm3, %v160_v18, %v154_v49  ;;  %v534_v2 = vunpack.c.l.bf16 %v525_v63 }
 0x154   :  { %v190_v26 = vmul.f32 %v176_v4, %v165_v21  ;;  %v191_v27 = vmul.f32 %v180_v5, %v164_v24  ;;  %v192_v28 = vmul.f32 %v184_v9, %v167_v25  ;;  %312 = vmatprep.subr.bf16.mxu0 %v274_v19  ;;  %v533_v4 = vunpack.c.h.bf16 %v524_v62 }
 0x155   :  { %313 = vmatpush1.bf16.msra.mxu0 %v273_v16  ;;  %v535_v5 = vunpack.c.h.bf16 %v525_v63  ;;  %v539_v19 = vunpack.c.h.bf16 %v527_v3 }
 0x156   :  { %v271_v29 = vpack.c.bf16 %v191_v27, %v704_v15  ;;  %v270_v31 = vpack.c.bf16 %v190_v26, %v712_v23  ;;  %v272_v32 = vpack.c.bf16 %v192_v28, %v708_v22  ;;  %v540_v28 = vunpack.c.l.bf16 %v528_v12 }
 0x158   :  { %314 = vmatprep.subr.bf16.mxu0 %v270_v31  ;;  %357 = vmatprep.subr.bf16.mxu1 %v272_v32 }
 0x159   :  { %315 = vmatpush1.bf16.msra.mxu0 %v269_v33  ;;  %358 = vmatpush1.bf16.msra.mxu1 %v271_v29  ;;  %v542_v29 = vunpack.c.l.bf16 %v529_v13 }
 0x15c   :  { %609 = vmatmul.mubr.msk.bf16.vlgmr.msra.gmra.mxu0 %vm296_vm4, %v629_v30  ;;  %610 = vmatmul.mubr.msk.bf16.vlgmr.msra.gmra.mxu1 %vm296_vm4, %v629_v30 }
 0x15d   :  { %450 = vmatprep.mubr.bf16.mxu0 %v632_v1  ;;  %503 = vmatprep.mubr.bf16.mxu1 %v632_v1 }
 0x15f   :  { %v289_v14 = vpop.permute.xlu0 %288  ;;  %v284_v35 = vpop.permute.xlu1 %283 }
 0x21c   :  { %v334_v15 = vpop.f32.mrf.mxu0  ;;  %v377_v23 = vpop.f32.mrf.mxu1 }
 0x21d   :  { %v335_v42 = vadd.f32 %v334_v15, %v284_v35  ;;  %v378_v43 = vadd.f32 %v377_v23, %v284_v35  ;;  %v530_v15 = vld [vmem:[%s844_s0 + $0x30] sm:$0xff]  ;;  %v531_v23 = vld [vmem:[%s844_s0 + $0x38] sm:$0xff] }
 0x21e   :  { %v336_v22 = vpop.f32.mrf.mxu0  ;;  %v379_v34 = vpop.f32.mrf.mxu1 }
 0x21f   :  { %v337_v38 = vadd.f32 %v336_v22, %v284_v35  ;;  %v380_v39 = vadd.f32 %v379_v34, %v284_v35  ;;  %v386_v54 = vmax.f32 %v335_v42, 0.0  ;;  %v388_v55 = vmax.f32 %v378_v43, 0.0 }
 0x220   :  { %v338_v36 = vpop.f32.mrf.mxu0  ;;  %v381_v37 = vpop.f32.mrf.mxu1  ;;  %v543_v35 = vunpack.c.h.bf16 %v529_v13  ;;  %v544_v42 = vunpack.c.l.bf16 %v530_v15  ;;  %v546_v43 = vunpack.c.l.bf16 %v531_v23 }
 0x221   :  { %v339_v40 = vadd.f32 %v338_v36, %v289_v14  ;;  %v382_v41 = vadd.f32 %v381_v37, %v289_v14  ;;  %v387_v50 = vmax.f32 %v337_v38, 0.0  ;;  %v389_v51 = vmax.f32 %v380_v39, 0.0 }
 0x222   :  { %v340_v44 = vpop.f32.mrf.mxu0  ;;  %v383_v45 = vpop.f32.mrf.mxu1 }
 0x223   :  { %v341_v46 = vadd.f32 %v340_v44, %v289_v14  ;;  %v384_v47 = vadd.f32 %v383_v45, %v289_v14  ;;  %v390_v48 = vmax.f32 %v339_v40, 0.0  ;;  %v392_v49 = vmax.f32 %v382_v41, 0.0 }
 0x224   :  { %v541_v14 = vunpack.c.h.bf16 %v528_v12 }
 0x225   :  { %v391_v52 = vmax.f32 %v341_v46, 0.0  ;;  %v393_v53 = vmax.f32 %v384_v47, 0.0  ;;  %v398_v58 = vpack.c.bf16 %v390_v48, %v386_v54  ;;  %v400_v59 = vpack.c.bf16 %v392_v49, %v388_v55 }
 0x227   :  { %v399_v56 = vpack.c.bf16 %v391_v52, %v387_v50  ;;  %v401_v57 = vpack.c.bf16 %v393_v53, %v389_v51  ;;  %v545_v50 = vunpack.c.h.bf16 %v530_v15  ;;  %v547_v51 = vunpack.c.h.bf16 %v531_v23 }
 0x229   :  { %432 = vmatprep.subr.bf16.mxu0 %v399_v56  ;;  %485 = vmatprep.subr.bf16.mxu1 %v401_v57 }
 0x22a   :  { %433 = vmatpush1.bf16.msra.mxu0 %v398_v58  ;;  %486 = vmatpush1.bf16.msra.mxu1 %v400_v59 }
 0x22d   :  { %613 = vmatmul.mubr.msk.bf16.vlgmr.msra.gmra.mxu0 %vm58_vm0, %v630_v60  ;;  %615 = vmatmul.mubr.msk.bf16.vlgmr.msra.gmra.mxu1 %vm58_vm0, %v630_v60 }
 0x22e   :  { %460 = vmatprep.mubr.bf16.mxu0 %v632_v1  ;;  %513 = vmatprep.mubr.bf16.mxu1 %v632_v1  ;;  %v526_v1 = vld [vmem:[%s844_s0 + $0x10] sm:$0xff] }
 0x22f   :  { %v536_v10 = vunpack.c.l.bf16 %v526_v1  ;;  %v537_v18 = vunpack.c.h.bf16 %v526_v1 }
 0x235   :  { %614 = vmatmul.mubr.msk.bf16.gmra.mxu0 %vm58_vm0, %v631_v61  ;;  %616 = vmatmul.mubr.msk.bf16.gmra.mxu1 %vm58_vm0, %v631_v61 }
 0x2ed   :  { %v452_v6 = vpop.f32.mrf.mxu0  ;;  %v505_v7 = vpop.f32.mrf.mxu1 }
 0x2ee   :  { %v548_v8 = vadd.f32 %v532_v0, %v452_v6  ;;  %v550_v9 = vadd.f32 %v534_v2, %v505_v7 }
 0x2ef   :  { %v454_v16 = vpop.f32.mrf.mxu0  ;;  %v507_v17 = vpop.f32.mrf.mxu1 }
 0x2f0   :  { %v564_v20 = vmax.f32 %v548_v8, 0.0  ;;  %v566_v21 = vmax.f32 %v550_v9, 0.0  ;;  %v549_v24 = vadd.f32 %v533_v4, %v454_v16  ;;  %v551_v25 = vadd.f32 %v535_v5, %v507_v17 }
 0x2f1   :  { %v456_v26 = vpop.f32.mrf.mxu0  ;;  %v509_v27 = vpop.f32.mrf.mxu1 }
 0x2f2   :  { %580 = vst [vmem:[%s845_s7] sm:$0xff] %v564_v20  ;;  %582 = vst [vmem:[%s845_s7 + $0x10] sm:$0xff] %v566_v21  ;;  %v565_v31 = vmax.f32 %v549_v24, 0.0  ;;  %v567_v32 = vmax.f32 %v551_v25, 0.0  ;;  %v552_v33 = vadd.f32 %v536_v10, %v456_v26  ;;  %v554_v30 = vadd.f32 %v538_v11, %v509_v27 }
 0x2f3   :  { %v458_v22 = vpop.f32.mrf.mxu0  ;;  %v511_v34 = vpop.f32.mrf.mxu1 }
 0x2f4   :  { %581 = vst [vmem:[%s845_s7 + $0x8] sm:$0xff] %v565_v31  ;;  %583 = vst [vmem:[%s845_s7 + $0x18] sm:$0xff] %v567_v32  ;;  %v568_v36 = vmax.f32 %v552_v33, 0.0  ;;  %v570_v37 = vmax.f32 %v554_v30, 0.0  ;;  %v553_v38 = vadd.f32 %v537_v18, %v458_v22  ;;  %v555_v39 = vadd.f32 %v539_v19, %v511_v34 }
 0x2f5   :  { %v462_v40 = vpop.f32.mrf.mxu0  ;;  %v515_v41 = vpop.f32.mrf.mxu1 }
 0x2f6   :  { %584 = vst [vmem:[%s845_s7 + $0x20] sm:$0xff] %v568_v36  ;;  %586 = vst [vmem:[%s845_s7 + $0x30] sm:$0xff] %v570_v37  ;;  %v569_v44 = vmax.f32 %v553_v38, 0.0  ;;  %v571_v45 = vmax.f32 %v555_v39, 0.0  ;;  %v556_v46 = vadd.f32 %v540_v28, %v462_v40  ;;  %v558_v47 = vadd.f32 %v542_v29, %v515_v41 }
 0x2f7   :  { %v464_v48 = vpop.f32.mrf.mxu0  ;;  %v517_v49 = vpop.f32.mrf.mxu1 }
 0x2f8   :  { %585 = vst [vmem:[%s845_s7 + $0x28] sm:$0xff] %v569_v44  ;;  %587 = vst [vmem:[%s845_s7 + $0x38] sm:$0xff] %v571_v45  ;;  %v572_v52 = vmax.f32 %v556_v46, 0.0  ;;  %v574_v53 = vmax.f32 %v558_v47, 0.0  ;;  %v557_v54 = vadd.f32 %v541_v14, %v464_v48  ;;  %v559_v55 = vadd.f32 %v543_v35, %v517_v49 }
 0x2f9   :  { %v466_v56 = vpop.f32.mrf.mxu0  ;;  %v519_v57 = vpop.f32.mrf.mxu1 }
 0x2fa   :  { %588 = vst [vmem:[%s845_s7 + $0x40] sm:$0xff] %v572_v52  ;;  %590 = vst [vmem:[%s845_s7 + $0x50] sm:$0xff] %v574_v53  ;;  %v573_v58 = vmax.f32 %v557_v54, 0.0  ;;  %v575_v59 = vmax.f32 %v559_v55, 0.0  ;;  %v560_v60 = vadd.f32 %v544_v42, %v466_v56  ;;  %v562_v61 = vadd.f32 %v546_v43, %v519_v57 }
 0x2fb   :  { %v468_v62 = vpop.f32.mrf.mxu0  ;;  %v521_v63 = vpop.f32.mrf.mxu1 }
 0x2fc   :  { %589 = vst [vmem:[%s845_s7 + $0x48] sm:$0xff] %v573_v58  ;;  %591 = vst [vmem:[%s845_s7 + $0x58] sm:$0xff] %v575_v59  ;;  %v576_v0 = vmax.f32 %v560_v60, 0.0  ;;  %v578_v2 = vmax.f32 %v562_v61, 0.0  ;;  %v561_v1 = vadd.f32 %v545_v50, %v468_v62  ;;  %v563_v3 = vadd.f32 %v547_v51, %v521_v63 }
 0x2fe   :  { %592 = vst [vmem:[%s845_s7 + $0x60] sm:$0xff] %v576_v0  ;;  %594 = vst [vmem:[%s845_s7 + $0x70] sm:$0xff] %v578_v2  ;;  %v577_v4 = vmax.f32 %v561_v1, 0.0  ;;  %v579_v5 = vmax.f32 %v563_v3, 0.0 }
 0x300   :  { %593 = vst [vmem:[%s845_s7 + $0x68] sm:$0xff] %v577_v4  ;;  %595 = vst [vmem:[%s845_s7 + $0x78] sm:$0xff] %v579_v5 }

</bundles_post_ra>
